<compile_context>
chip_gen: v7x
topology: tpu7x:2x2x1
jax: 0.10.0
libtpu: 0.0.40
codegen_flags: <defaults>
</compile_context>

<pallas_src>
import functools
import math

import jax
import jax.numpy as jnp
from jax import lax
from jax.experimental import pallas as pl
from jax.experimental.pallas import tpu as pltpu

_INV_SQRT2 = 0.7071067811865476
_SQRT_2_OVER_PI = 0.7978845608028654


def _gelu(x, approximate):
    if approximate:
        # tanh GELU: transcendental goes to the EUP slot (cheaper epilogue).
        return 0.5 * x * (1.0 + jnp.tanh(_SQRT_2_OVER_PI *
                                         (x + 0.044715 * x * x * x)))
    # erf-based GELU, matches torch.nn.GELU() / transformers ACT2FN["gelu"].
    return 0.5 * x * (1.0 + lax.erf(x * _INV_SQRT2))


def _round_up(a, b):
    return -(-a // b) * b


def _tconv_gelu_kernel(x_ref, w_ref, b_ref, o_ref, xw_ref, *,
                       approx_gelu, matmul_dtype):
    # x_ref : (N, C_in_pad, L)            unpadded NCL input, all batches
    # w_ref : (k_taps, M_pad, C_in_pad)   per-tap polyphase weight
    # b_ref : (M_pad, 1)                  phase-replicated bias
    # o_ref : (N, M_pad, Q_pad)           phase-stacked, lane-dense output
    # xw_ref: (N, C_in_pad, k_taps-1+Q_pad) VMEM scratch (zero-extended input)
    n_batch, _, seq_len = x_ref.shape
    k_taps, m_pad, _ = w_ref.shape
    q_pad = o_ref.shape[2]

    # Stage the zero-extended input once in VMEM (replaces the previous
    # host-side HBM pad round trip).  xw[n, :, k_taps-1+l] = x[n, :, l].
    xw_ref[...] = jnp.zeros_like(xw_ref)
    xw_ref[:, :, k_taps - 1:k_taps - 1 + seq_len] = x_ref[...]

    bias = b_ref[...]                                  # (m_pad, 1) f32

    for n in range(n_batch):            # static, small N; one single grid step
        acc = None
        for j in range(k_taps):         # per-tap dots, f32 accumulate, no concat
            off = k_taps - 1 - j
            slab = xw_ref[n, :, off:off + q_pad]       # (C_in_pad, Q_pad)
            w_j = w_ref[j]                             # (M_pad, C_in_pad)
            if matmul_dtype is not None:
                slab = slab.astype(matmul_dtype)
                w_j = w_j.astype(matmul_dtype)
            d = jnp.dot(w_j, slab, preferred_element_type=jnp.float32)
            acc = d if acc is None else acc + d
        acc = acc + bias                               # (M_pad, Q_pad)+(M_pad,1)
        o_ref[n] = _gelu(acc, approx_gelu).astype(o_ref.dtype)


def pack_transpose_conv_params(weight, bias, *, stride):
    """Pack ConvTranspose1d params into the polyphase layout the kernel reads.

    weight: (C_in, C_out, K), bias: (C_out,) or None.
    Call ONCE at init (hoisted off the per-call path)."""
    C_in, C_out, K = weight.shape
    k_taps = pl.cdiv(K, stride)
    C_in_pad = _round_up(C_in, 8)
    M = stride * C_out
    M_pad = _round_up(M, 8)
    f32 = jnp.float32

    w = jnp.pad(weight.astype(f32),
                ((0, C_in_pad - C_in), (0, 0), (0, k_taps * stride - K)))
    # w[ci, co, j*stride + r] -> w_packed[j, r*C_out + co, ci]
    w = w.reshape(C_in_pad, C_out, k_taps, stride)
    w = jnp.transpose(w, (2, 3, 1, 0)).reshape(k_taps, M, C_in_pad)
    w_packed = jnp.pad(w, ((0, 0), (0, M_pad - M), (0, 0)))

    if bias is None:
        bias = jnp.zeros((C_out,), f32)
    b = jnp.tile(bias.astype(f32), stride)          # row r*C_out+co -> bias[co]
    b_packed = jnp.pad(b, (0, M_pad - M)).reshape(M_pad, 1)
    return w_packed, b_packed


def transpose_conv_gelu(x, w_packed, b_packed, *, out_channel, kernel_size,
                        stride, out_pad, approx_gelu=False, matmul_dtype=None):
    """x: (N, C_in, L) NCL.  Returns (N, C_out, L_out) NCL, matching
    nn.ConvTranspose1d(padding=0, output_padding=out_pad) + GELU."""
    N, C_in, L = x.shape
    k_taps, M_pad, C_in_pad = w_packed.shape
    L_out = (L - 1) * stride + kernel_size + out_pad

    # Polyphase geometry: output phase r (t = q*stride + r) is an ordinary
    # correlation over x with k_taps = ceil(K/stride) taps.
    Q = pl.cdiv(L_out, stride)             # outputs per phase (max over phases)
    Q_pad = _round_up(Q, 128)              # lane-dense output width
    L_xp = k_taps - 1 + Q_pad              # zero-extended input (VMEM scratch)
    M = stride * out_channel

    if C_in != C_in_pad:                   # no-op when C_in % 8 == 0
        x = jnp.pad(x, ((0, 0), (0, C_in_pad - C_in), (0, 0)))

    kernel = functools.partial(_tconv_gelu_kernel,
                               approx_gelu=approx_gelu,
                               matmul_dtype=matmul_dtype)

    out = pl.pallas_call(
        kernel,
        out_shape=jax.ShapeDtypeStruct((N, M_pad, Q_pad), x.dtype),
        grid=(1,),
        in_specs=[
            pl.BlockSpec((N, C_in_pad, L), lambda i: (0, 0, 0)),
            pl.BlockSpec((k_taps, M_pad, C_in_pad), lambda i: (0, 0, 0)),
            pl.BlockSpec((M_pad, 1), lambda i: (0, 0)),
        ],
        out_specs=pl.BlockSpec((N, M_pad, Q_pad), lambda i: (0, 0, 0)),
        scratch_shapes=[pltpu.VMEM((N, C_in_pad, L_xp), x.dtype)],
        compiler_params=pltpu.CompilerParams(
            dimension_semantics=("arbitrary",)),
    )(x, w_packed, b_packed)

    # Interleave phases: y[n, co, q*stride + r] = out[n, r*C_out + co, q].
    y = out[:, :M, :Q].reshape(N, stride, out_channel, Q)
    y = jnp.transpose(y, (0, 2, 3, 1)).reshape(N, out_channel, Q * stride)
    return y[:, :, :L_out]


def _reference(x, weight, bias, *, stride, out_pad):
    """Pure-JAX reference matching nn.ConvTranspose1d(padding=0) + exact GELU."""
    N, C_in, L = x.shape
    _, C_out, K = weight.shape
    L_out = (L - 1) * stride + K + out_pad
    y = jnp.zeros((N, C_out, L_out), jnp.float32)
    for k in range(K):
        contrib = jnp.einsum('ncl,co->nol', x, weight[:, :, k])
        idx = jnp.arange(L) * stride + k
        y = y.at[:, :, idx].add(contrib)
    y = y + bias[None, :, None]
    return _gelu(y, False)


if __name__ == "__main__":
    # Module config: TransposeConvLayer(in_channel=8, out_channel=16,
    #                                   kernel_size=4, stride=2, bias=True,
    #                                   out_pad=1, hidden_act='gelu')
    in_channel, out_channel, kernel_size, stride, out_pad = 8, 16, 4, 2, 1
    N, L = 2, 16

    key = jax.random.PRNGKey(0)
    kx, kw, kb = jax.random.split(key, 3)

    x = jax.random.normal(kx, (N, in_channel, L), jnp.float32)
    # nn.ConvTranspose1d weight shape: (in_channel, out_channel, kernel_size)
    fan_in = in_channel * kernel_size
    bound = 1.0 / math.sqrt(fan_in)
    weight = jax.random.uniform(kw, (in_channel, out_channel, kernel_size),
                                jnp.float32, -bound, bound)
    bias = jax.random.uniform(kb, (out_channel,), jnp.float32, -bound, bound)

    # Pack once at init (off the per-call path).
    w_packed, b_packed = pack_transpose_conv_params(weight, bias, stride=stride)

    out = transpose_conv_gelu(x, w_packed, b_packed,
                              out_channel=out_channel,
                              kernel_size=kernel_size,
                              stride=stride, out_pad=out_pad)
    out = jax.block_until_ready(out)

    ref = _reference(x, weight, bias, stride=stride, out_pad=out_pad)
    assert out.shape == ref.shape, (out.shape, ref.shape)
    assert jnp.allclose(out, ref, atol=1e-5, rtol=1e-5), \
        float(jnp.max(jnp.abs(out - ref)))

    print("KERNEL_OK")
</pallas_src>

<mosaic_0001>
module attributes {stable_mosaic.version = 11 : i64} {
  func.func @_tconv_gelu_kernel(%arg0: i32, %arg1: memref<2x8x16xf32, #tpu.memory_space<vmem>>, %arg2: memref<2x32x8xf32, #tpu.memory_space<vmem>>, %arg3: memref<32x1xf32, #tpu.memory_space<vmem>>, %arg4: memref<2x32x128xf32, #tpu.memory_space<vmem>>, %arg5: memref<2x8x129xf32, #tpu.memory_space<vmem>>) attributes {dimension_semantics = [#tpu.dimension_semantics<arbitrary>], iteration_bounds = array<i64: 1>, scalar_prefetch = 0 : i64, scratch_operands = 1 : i64, tpu.core_type = #tpu.core_type<tc>, window_params = [{pipeline_mode = #tpu.pipeline_mode<synchronous>, transform_indices = @transform_0, window_bounds = array<i64: 2, 8, 16>}, {pipeline_mode = #tpu.pipeline_mode<synchronous>, transform_indices = @transform_1, window_bounds = array<i64: 2, 32, 8>}, {pipeline_mode = #tpu.pipeline_mode<synchronous>, transform_indices = @transform_2, window_bounds = array<i64: 32, 1>}, {pipeline_mode = #tpu.pipeline_mode<synchronous>, transform_indices = @transform_3, window_bounds = array<i64: 2, 32, 128>}]} {
    %cst = arith.constant 0.000000e+00 : f32
    %0 = vector.broadcast %cst : f32 to vector<2x8x129xf32>
    %c0 = arith.constant 0 : index
    %c0_0 = arith.constant 0 : index
    %c0_1 = arith.constant 0 : index
    %1 = vector.load %arg5[%c0, %c0_0, %c0_1] : memref<2x8x129xf32, #tpu.memory_space<vmem>>, vector<2x8x129xf32>
    tpu.vector_store %arg5[%c0, %c0_0, %c0_1], %0 {strides = array<i32>} : memref<2x8x129xf32, #tpu.memory_space<vmem>>, vector<2x8x129xf32>,
    %c0_2 = arith.constant 0 : index
    %c0_3 = arith.constant 0 : index
    %c0_4 = arith.constant 0 : index
    %2 = vector.load %arg1[%c0_2, %c0_3, %c0_4] : memref<2x8x16xf32, #tpu.memory_space<vmem>>, vector<2x8x16xf32>
    %c0_5 = arith.constant 0 : index
    %c0_6 = arith.constant 0 : index
    %c1 = arith.constant 1 : index
    %3 = vector.load %arg5[%c0_5, %c0_6, %c1] : memref<2x8x129xf32, #tpu.memory_space<vmem>>, vector<2x8x16xf32>
    tpu.vector_store %arg5[%c0_5, %c0_6, %c1], %2 {strides = array<i32>} : memref<2x8x129xf32, #tpu.memory_space<vmem>>, vector<2x8x16xf32>,
    %c0_7 = arith.constant 0 : index
    %c0_8 = arith.constant 0 : index
    %4 = vector.load %arg3[%c0_7, %c0_8] : memref<32x1xf32, #tpu.memory_space<vmem>>, vector<32x1xf32>
    %c0_9 = arith.constant 0 : index
    %c0_10 = arith.constant 0 : index
    %c1_11 = arith.constant 1 : index
    %5 = vector.load %arg5[%c0_9, %c0_10, %c1_11] : memref<2x8x129xf32, #tpu.memory_space<vmem>>, vector<1x8x128xf32>
    %6 = vector.shape_cast %5 : vector<1x8x128xf32> to vector<8x128xf32>
    %c0_12 = arith.constant 0 : index
    %c0_13 = arith.constant 0 : index
    %c0_14 = arith.constant 0 : index
    %7 = vector.load %arg2[%c0_12, %c0_13, %c0_14] : memref<2x32x8xf32, #tpu.memory_space<vmem>>, vector<1x32x8xf32>
    %8 = vector.shape_cast %7 : vector<1x32x8xf32> to vector<32x8xf32>
    %cst_15 = arith.constant dense<0.000000e+00> : vector<32x128xf32>
    %9 = tpu.matmul %8, %6, %cst_15 {dimension_numbers = #tpu.dot_dimension_numbers<[1], [0], [0], [1], [0, 0, 1, 1], [], []>} : vector<32x8xf32>, vector<8x128xf32>, vector<32x128xf32> -> vector<32x128xf32>
    %c0_16 = arith.constant 0 : index
    %c0_17 = arith.constant 0 : index
    %c0_18 = arith.constant 0 : index
    %10 = vector.load %arg5[%c0_16, %c0_17, %c0_18] : memref<2x8x129xf32, #tpu.memory_space<vmem>>, vector<1x8x128xf32>
    %11 = vector.shape_cast %10 : vector<1x8x128xf32> to vector<8x128xf32>
    %c1_19 = arith.constant 1 : index
    %c0_20 = arith.constant 0 : index
    %c0_21 = arith.constant 0 : index
    %12 = vector.load %arg2[%c1_19, %c0_20, %c0_21] : memref<2x32x8xf32, #tpu.memory_space<vmem>>, vector<1x32x8xf32>
    %13 = vector.shape_cast %12 : vector<1x32x8xf32> to vector<32x8xf32>
    %cst_22 = arith.constant dense<0.000000e+00> : vector<32x128xf32>
    %14 = tpu.matmul %13, %11, %cst_22 {dimension_numbers = #tpu.dot_dimension_numbers<[1], [0], [0], [1], [0, 0, 1, 1], [], []>} : vector<32x8xf32>, vector<8x128xf32>, vector<32x128xf32> -> vector<32x128xf32>
    %15 = arith.addf %9, %14 : vector<32x128xf32>
    %16 = vector.broadcast %4 : vector<32x1xf32> to vector<32x128xf32>
    %17 = arith.addf %15, %16 : vector<32x128xf32>
    %cst_23 = arith.constant 5.000000e-01 : f32
    %18 = vector.broadcast %cst_23 : f32 to vector<32x128xf32>
    %19 = arith.mulf %18, %17 : vector<32x128xf32>
    %cst_24 = arith.constant 0.707106769 : f32
    %20 = vector.broadcast %cst_24 : f32 to vector<32x128xf32>
    %21 = arith.mulf %17, %20 : vector<32x128xf32>
    %22 = math.erf %21 : vector<32x128xf32>
    %cst_25 = arith.constant 1.000000e+00 : f32
    %23 = vector.broadcast %cst_25 : f32 to vector<32x128xf32>
    %24 = arith.addf %23, %22 : vector<32x128xf32>
    %25 = arith.mulf %19, %24 : vector<32x128xf32>
    %c0_26 = arith.constant 0 : index
    %c0_27 = arith.constant 0 : index
    %c0_28 = arith.constant 0 : index
    %26 = vector.load %arg4[%c0_26, %c0_27, %c0_28] : memref<2x32x128xf32, #tpu.memory_space<vmem>>, vector<1x32x128xf32>
    %27 = vector.shape_cast %26 : vector<1x32x128xf32> to vector<32x128xf32>
    %28 = vector.shape_cast %25 : vector<32x128xf32> to vector<1x32x128xf32>
    tpu.vector_store %arg4[%c0_26, %c0_27, %c0_28], %28 {strides = array<i32>} : memref<2x32x128xf32, #tpu.memory_space<vmem>>, vector<1x32x128xf32>,
    %c1_29 = arith.constant 1 : index
    %c0_30 = arith.constant 0 : index
    %c1_31 = arith.constant 1 : index
    %29 = vector.load %arg5[%c1_29, %c0_30, %c1_31] : memref<2x8x129xf32, #tpu.memory_space<vmem>>, vector<1x8x128xf32>
    %30 = vector.shape_cast %29 : vector<1x8x128xf32> to vector<8x128xf32>
    %c0_32 = arith.constant 0 : index
    %c0_33 = arith.constant 0 : index
    %c0_34 = arith.constant 0 : index
    %31 = vector.load %arg2[%c0_32, %c0_33, %c0_34] : memref<2x32x8xf32, #tpu.memory_space<vmem>>, vector<1x32x8xf32>
    %32 = vector.shape_cast %31 : vector<1x32x8xf32> to vector<32x8xf32>
    %cst_35 = arith.constant dense<0.000000e+00> : vector<32x128xf32>
    %33 = tpu.matmul %32, %30, %cst_35 {dimension_numbers = #tpu.dot_dimension_numbers<[1], [0], [0], [1], [0, 0, 1, 1], [], []>} : vector<32x8xf32>, vector<8x128xf32>, vector<32x128xf32> -> vector<32x128xf32>
    %c1_36 = arith.constant 1 : index
    %c0_37 = arith.constant 0 : index
    %c0_38 = arith.constant 0 : index
    %34 = vector.load %arg5[%c1_36, %c0_37, %c0_38] : memref<2x8x129xf32, #tpu.memory_space<vmem>>, vector<1x8x128xf32>
    %35 = vector.shape_cast %34 : vector<1x8x128xf32> to vector<8x128xf32>
    %c1_39 = arith.constant 1 : index
    %c0_40 = arith.constant 0 : index
    %c0_41 = arith.constant 0 : index
    %36 = vector.load %arg2[%c1_39, %c0_40, %c0_41] : memref<2x32x8xf32, #tpu.memory_space<vmem>>, vector<1x32x8xf32>
    %37 = vector.shape_cast %36 : vector<1x32x8xf32> to vector<32x8xf32>
    %cst_42 = arith.constant dense<0.000000e+00> : vector<32x128xf32>
    %38 = tpu.matmul %37, %35, %cst_42 {dimension_numbers = #tpu.dot_dimension_numbers<[1], [0], [0], [1], [0, 0, 1, 1], [], []>} : vector<32x8xf32>, vector<8x128xf32>, vector<32x128xf32> -> vector<32x128xf32>
    %39 = arith.addf %33, %38 : vector<32x128xf32>
    %40 = vector.broadcast %4 : vector<32x1xf32> to vector<32x128xf32>
    %41 = arith.addf %39, %40 : vector<32x128xf32>
    %cst_43 = arith.constant 5.000000e-01 : f32
    %42 = vector.broadcast %cst_43 : f32 to vector<32x128xf32>
    %43 = arith.mulf %42, %41 : vector<32x128xf32>
    %cst_44 = arith.constant 0.707106769 : f32
    %44 = vector.broadcast %cst_44 : f32 to vector<32x128xf32>
    %45 = arith.mulf %41, %44 : vector<32x128xf32>
    %46 = math.erf %45 : vector<32x128xf32>
    %cst_45 = arith.constant 1.000000e+00 : f32
    %47 = vector.broadcast %cst_45 : f32 to vector<32x128xf32>
    %48 = arith.addf %47, %46 : vector<32x128xf32>
    %49 = arith.mulf %43, %48 : vector<32x128xf32>
    %c1_46 = arith.constant 1 : index
    %c0_47 = arith.constant 0 : index
    %c0_48 = arith.constant 0 : index
    %50 = vector.load %arg4[%c1_46, %c0_47, %c0_48] : memref<2x32x128xf32, #tpu.memory_space<vmem>>, vector<1x32x128xf32>
    %51 = vector.shape_cast %50 : vector<1x32x128xf32> to vector<32x128xf32>
    %52 = vector.shape_cast %49 : vector<32x128xf32> to vector<1x32x128xf32>
    tpu.vector_store %arg4[%c1_46, %c0_47, %c0_48], %52 {strides = array<i32>} : memref<2x32x128xf32, #tpu.memory_space<vmem>>, vector<1x32x128xf32>,
    return
  }
  func.func @transform_0(%arg0: i32) -> (i32, i32, i32) {
    %c0_i32 = arith.constant 0 : i32
    %c0_i32_0 = arith.constant 0 : i32
    %c0_i32_1 = arith.constant 0 : i32
    %c0_i32_2 = arith.constant 0 : i32
    return %c0_i32, %c0_i32_0, %c0_i32_1 : i32, i32, i32
  }
  func.func @transform_1(%arg0: i32) -> (i32, i32, i32) {
    %c0_i32 = arith.constant 0 : i32
    %c0_i32_0 = arith.constant 0 : i32
    %c0_i32_1 = arith.constant 0 : i32
    %c0_i32_2 = arith.constant 0 : i32
    return %c0_i32, %c0_i32_0, %c0_i32_1 : i32, i32, i32
  }
  func.func @transform_2(%arg0: i32) -> (i32, i32) {
    %c0_i32 = arith.constant 0 : i32
    %c0_i32_0 = arith.constant 0 : i32
    %c0_i32_1 = arith.constant 0 : i32
    return %c0_i32, %c0_i32_0 : i32, i32
  }
  func.func @transform_3(%arg0: i32) -> (i32, i32, i32) {
    %c0_i32 = arith.constant 0 : i32
    %c0_i32_0 = arith.constant 0 : i32
    %c0_i32_1 = arith.constant 0 : i32
    %c0_i32_2 = arith.constant 0 : i32
    return %c0_i32, %c0_i32_0, %c0_i32_1 : i32, i32, i32
  }
}

</mosaic_0001>

<bundles_post_ra>
// kernel: tpu_custom_call.1
= control target key start
LH: loop header
LB: loop body
LE: loop exit
PB: predicated region body
PF: predicated region fallthrough
CT: control target
= control target key end

     0   :  { %vm16_vm0 = vcmask 7168   ;;  %s691_s14 = smov 1   ;;  %v692_v1 = vmov 0.0   ;;  %vm48_vm1 = vcmask 64512   ;;  %s788_s0 = inlined_call_operand.vmem [shape: f32[2,8,16], index: 0, kind: input, shape index: {}]   ;;  %s789_s1 = inlined_call_operand.vmem [shape: f32[2,32,8], index: 1, kind: input, shape index: {}]   ;;  %s790_s2 = inlined_call_operand.vmem [shape: f32[32,1], index: 2, kind: input, shape index: {}]   ;;  %s791_s3 = inlined_call_operand.hbm [shape: f32[2,32,128], index: 3, kind: output, shape index: {}]  }
   0x1   :  { %v20_v0 = vld [vmem:[%s788_s0] sm:$0xff]  ;;  %15 = vst [vmem:[#allocation2] sm:$0xff] %v692_v1  ;;  %17 = vst.msk [vmem:[#allocation2 + $0x8] sm:$0xff] %vm16_vm0, %v692_v1  ;;  %v21_v3 = vld [vmem:[%s788_s0 + $0x8] sm:$0xff] }
   0x2   :  { %24 = vrot.lane.b32.xlu0 %v20_v0, %s691_s14  ;;  %19 = vst.msk [vmem:[#allocation2 + $0x18] sm:$0xff] %vm16_vm0, %v692_v1  ;;  %18 = vst [vmem:[#allocation2 + $0x10] sm:$0xff] %v692_v1  ;;  %v558_v2 = vld [vmem:[%s789_s1 + $0x20] sm:$0xff] }
   0x3   :  { %604 = vmatprep.mubr.msk.f32.mxu0 %vm48_vm1, %v558_v2  ;;  %620 = vmatprep.mubr.msk.f32.mxu1 %vm48_vm1, %v558_v2 }
   0x4   :  { %8 = vsyncpa [#allocation4], 0  ;;  %s693_s19 = smov 127   ;;  %vm30_vm2 = vcmask 138248   ;;  %v559_v8 = vld [vmem:[%s789_s1 + $0x28] sm:$0xff]  ;;  %v560_v9 = vld [vmem:[%s789_s1 + $0x30] sm:$0xff] }
   0x5   :  { %v694_v10 = vmov 0   ;;  %v561_v13 = vld [vmem:[%s789_s1 + $0x38] sm:$0xff]  ;;  %v39_v14 = vld [vmem:[%s789_s1] sm:$0xff]  ;;  %v34_v16 = vld [vmem:[%s790_s2 + $0x8] sm:$0xff]  ;;  %vm152_vm3 = vcmask 1039360  }
   0x6   :  { %26 = vrot.lane.b32.xlu0 %v21_v3, %s691_s14  ;;  %650 = vset.pattern.permute.xlu1 %v694_v10  ;;  %v33_v15 = vld [vmem:[%s790_s2] sm:$0xff]  ;;  %v36_v17 = vld [vmem:[%s790_s2 + $0x18] sm:$0xff]  ;;  %v35_v18 = vld [vmem:[%s790_s2 + $0x10] sm:$0xff] }
   0x7   :  { %649 = vset.pattern.permute.xlu0 %v694_v10  ;;  %v40_v22 = vld [vmem:[%s789_s1 + $0x8] sm:$0xff]  ;;  %v41_v23 = vld [vmem:[%s789_s1 + $0x10] sm:$0xff]  ;;  %v42_v26 = vld [vmem:[%s789_s1 + $0x18] sm:$0xff]  ;;  %s695_s1 = smov [#allocation3]  }
   0x8   :  { %v38_v4 = vld [vmem:[#allocation2 + $0x8] sm:$0xff]  ;;  %s547_s13 = sshll.u32 %s695_s1, 4  ;;  %s548_s13 = int_to_ptr.vmem [resolvable:$true] %s547_s13 }
   0x9   :  { %150 = vrot.lane.b32.xlu1 %v38_v4, %s693_s19  ;;  %v302_v11 = vld [vmem:[#allocation2 + $0x18] sm:$0xff]  ;;  %s667_s14 = scalar_lea.vmem %s548_s13, 1024  ;;  %p672_p1 = scmp.lt.s32.totalorder %s548_s13, %s548_s13 }
   0xa   :  { %p668_p0 = scmp.ne.s32.totalorder %s548_s13, %s667_s14  ;;  %p673_p2 = scmp.lt.s32.totalorder %s667_s14, %s667_s14 }
   0xc   :  { %p674_p3 = por %p673_p2, %p672_p1 }
   0xe   :  { %p675_p4 = pnand %p674_p3, %p668_p0 }
  0x74   :  { %v25_v5 = vpop.permute.xlu0 %24 }
  0x75   :  { %31 = vst.msk [vmem:[#allocation2] sm:$0xff] %vm30_vm2, %v25_v5 }
  0x78   :  { %v27_v6 = vpop.permute.xlu0 %26 }
  0x79   :  { %32 = vst.msk [vmem:[#allocation2 + $0x10] sm:$0xff] %vm30_vm2, %v27_v6 }
  0x7b   :  { %v151_v19 = vpop.permute.xlu1 %150 }
  0x7c   :  { %v37_v7 = vld [vmem:[#allocation2] sm:$0xff] }
  0x7d   :  { %148 = vrot.lane.b32.xlu1 %v37_v7, %s693_s19  ;;  %602 = vmatprep.subr.mxu0 %v37_v7 }
  0x7e   :  { %603 = vmatpush3.msra.mxu0 %v37_v7 }
  0x7f   :  { %605 = vmatmul.mubr.msk.f32.vlgmr.msra.gmra.mrb[0].mxu0 %vm48_vm1, %v559_v8 }
  0x80   :  { %v301_v12 = vld [vmem:[#allocation2 + $0x10] sm:$0xff]  ;;  %607 = vmatprep.mubr.msk.f32.mxu0 %vm48_vm1, %v560_v9 }
  0x81   :  { %410 = vrot.lane.b32.xlu0 %v301_v12, %s693_s19  ;;  %618 = vmatprep.subr.mxu1 %v301_v12 }
  0x82   :  { %412 = vrot.lane.b32.xlu1 %v302_v11, %s693_s19  ;;  %619 = vmatpush3.msra.mxu1 %v301_v12 }
  0x83   :  { %621 = vmatmul.mubr.msk.f32.vlgmr.msra.gmra.mrb[0].mxu1 %vm48_vm1, %v559_v8  ;;  %608 = vmatmul.mubr.msk.f32.gmra.mrb[2].mxu0 %vm48_vm1, %v561_v13 }
  0x84   :  { %612 = vmatprep.mubr.msk.f32.mxu0 %vm48_vm1, %v39_v14  ;;  %623 = vmatprep.mubr.msk.f32.mxu1 %vm48_vm1, %v560_v9 }
  0x85   :  { %254 = vperm.xlu0 %649, %v33_v15  }
  0x86   :  { %259 = vperm.xlu1 %650, %v34_v16  }
  0x87   :  { %624 = vmatmul.mubr.msk.f32.gmra.mrb[2].mxu1 %vm48_vm1, %v561_v13 }
  0x88   :  { %628 = vmatprep.mubr.msk.f32.mxu1 %vm48_vm1, %v39_v14 }
  0x89   :  { %269 = vperm.xlu0 %649, %v36_v17  }
  0x8a   :  { %264 = vperm.xlu1 %650, %v35_v18  }
  0xef   :  { %v149_v20 = vpop.permute.xlu1 %148 }
  0xf0   :  { %v153_v21 = vsel %vm152_vm3, %v149_v20, %v151_v19 }
  0xf1   :  { %610 = vmatprep.subr.mxu0 %v153_v21 }
  0xf2   :  { %611 = vmatpush3.msra.mxu0 %v153_v21 }
  0xf3   :  { %v411_v24 = vpop.permute.xlu0 %410  ;;  %613 = vmatmul.mubr.msk.f32.vlgmr.msra.gmra.mrb[0].mxu0 %vm48_vm1, %v40_v22 }
  0xf4   :  { %v413_v25 = vpop.permute.xlu1 %412  ;;  %615 = vmatprep.mubr.msk.f32.mxu0 %vm48_vm1, %v41_v23 }
  0xf5   :  { %v414_v27 = vsel %vm152_vm3, %v411_v24, %v413_v25 }
  0xf6   :  { %626 = vmatprep.subr.mxu1 %v414_v27 }
  0xf7   :  { %627 = vmatpush3.msra.mxu1 %v414_v27  ;;  %616 = vmatmul.mubr.msk.f32.gmra.mrb[2].mxu0 %vm48_vm1, %v42_v26 }
  0xf8   :  { %629 = vmatmul.mubr.msk.f32.vlgmr.msra.gmra.mrb[0].mxu1 %vm48_vm1, %v40_v22 }
  0xf9   :  { %631 = vmatprep.mubr.msk.f32.mxu1 %vm48_vm1, %v41_v23 }
  0xfc   :  { %632 = vmatmul.mubr.msk.f32.gmra.mrb[2].mxu1 %vm48_vm1, %v42_v26 }
 0x104   :  { %v255_v28 = vpop.permute.xlu0 %254 }
 0x105   :  { %v260_v29 = vpop.permute.xlu1 %259 }
 0x108   :  { %v270_v34 = vpop.permute.xlu0 %269 }
 0x109   :  { %v265_v36 = vpop.permute.xlu1 %264 }
 0x1c6   :  { %v614_v30 = vpop.f32.mrb[0].mxu0 }
 0x1c7   :  { %v273_v31 = vadd.f32 %v614_v30, %v260_v29  ;;  %v233_v32 = vpop.f32.mrb[1].mxu0 }
 0x1c8   :  { %v272_v33 = vadd.f32 %v255_v28, %v233_v32 }
 0x1c9   :  { %v281_v35 = vmul.f32 0.70710677, %v273_v31  ;;  %v277_v58 = vmul.f32 0.5, %v273_v31 }
 0x1ca   :  { %v280_v37 = vmul.f32 0.70710677, %v272_v33  ;;  %v617_v38 = vpop.f32.mrb[2].mxu0  ;;  %v276_v60 = vmul.f32 0.5, %v272_v33 }
 0x1cb   :  { %651 = verf.f32 %v281_v35  ;;  %v275_v39 = vadd.f32 %v617_v38, %v270_v34  ;;  %v630_v40 = vpop.f32.mrb[0].mxu1  ;;  %v243_v41 = vpop.f32.mrb[3].mxu0 }
 0x1cc   :  { %653 = verf.f32 %v280_v37  ;;  %v514_v42 = vadd.f32 %v630_v40, %v260_v29  ;;  %v494_v43 = vpop.f32.mrb[1].mxu1  ;;  %v274_v44 = vadd.f32 %v265_v36, %v243_v41 }
 0x1cd   :  { %v283_v45 = vmul.f32 0.70710677, %v275_v39  ;;  %v513_v46 = vadd.f32 %v494_v43, %v255_v28  ;;  %v279_v2 = vmul.f32 0.5, %v275_v39 }
 0x1ce   :  { %v522_v47 = vmul.f32 0.70710677, %v514_v42  ;;  %v282_v48 = vmul.f32 0.70710677, %v274_v44  ;;  %v518_v5 = vmul.f32 0.5, %v514_v42  ;;  %v278_v12 = vmul.f32 0.5, %v274_v44 }
 0x1cf   :  { %655 = verf.f32 %v283_v45  ;;  %v521_v49 = vmul.f32 0.70710677, %v513_v46  ;;  %v633_v50 = vpop.f32.mrb[2].mxu1  ;;  %v517_v9 = vmul.f32 0.5, %v513_v46 }
 0x1d0   :  { %657 = verf.f32 %v522_v47  ;;  %v516_v51 = vadd.f32 %v633_v50, %v270_v34  ;;  %v504_v52 = vpop.f32.mrb[3].mxu1 }
 0x1d1   :  { %659 = verf.f32 %v521_v49  ;;  %v515_v53 = vadd.f32 %v504_v52, %v265_v36 }
 0x1d2   :  { %661 = verf.f32 %v282_v48  ;;  %v524_v54 = vmul.f32 0.70710677, %v516_v51  ;;  %v520_v18 = vmul.f32 0.5, %v516_v51 }
 0x1d3   :  { %v523_v55 = vmul.f32 0.70710677, %v515_v53  ;;  %v519_v20 = vmul.f32 0.5, %v515_v53 }
 0x1d4   :  { %663 = verf.f32 %v524_v54 }
 0x1d5   :  { %v652_v56 = vpop.eup %651  ;;  %665 = verf.f32 %v523_v55 }
 0x1d6   :  { %v654_v57 = vpop.eup %653  ;;  %v289_v59 = vadd.f32 1.0, %v652_v56 }
 0x1d7   :  { %v288_v61 = vadd.f32 1.0, %v654_v57 }
 0x1d8   :  { %v293_v62 = vmul.f32 %v289_v59, %v277_v58 }
 0x1d9   :  { %v656_v63 = vpop.eup %655  ;;  %v292_v0 = vmul.f32 %v288_v61, %v276_v60 }
 0x1da   :  { %v658_v1 = vpop.eup %657  ;;  %297 = vst [vmem:[#allocation3 + $0x8] sm:$0xff] %v293_v62  ;;  %v291_v3 = vadd.f32 1.0, %v656_v63 }
 0x1db   :  { %v660_v4 = vpop.eup %659  ;;  %296 = vst [vmem:[#allocation3] sm:$0xff] %v292_v0  ;;  %v530_v6 = vadd.f32 1.0, %v658_v1 }
 0x1dc   :  { %v662_v7 = vpop.eup %661  ;;  %v295_v8 = vmul.f32 %v291_v3, %v279_v2  ;;  %v529_v10 = vadd.f32 1.0, %v660_v4 }
 0x1dd   :  { %v534_v11 = vmul.f32 %v530_v6, %v518_v5  ;;  %v290_v13 = vadd.f32 1.0, %v662_v7 }
 0x1de   :  { %v664_v14 = vpop.eup %663  ;;  %299 = vst [vmem:[#allocation3 + $0x18] sm:$0xff] %v295_v8  ;;  %v533_v15 = vmul.f32 %v529_v10, %v517_v9 }
 0x1df   :  { %v666_v16 = vpop.eup %665  ;;  %539 = vst [vmem:[#allocation3 + $0x28] sm:$0xff] %v534_v11  ;;  %v294_v17 = vmul.f32 %v290_v13, %v278_v12  ;;  %v532_v19 = vadd.f32 1.0, %v664_v14 }
 0x1e0   :  { %538 = vst [vmem:[#allocation3 + $0x20] sm:$0xff] %v533_v15  ;;  %v531_v21 = vadd.f32 1.0, %v666_v16 }
 0x1e1   :  { %298 = vst [vmem:[#allocation3 + $0x10] sm:$0xff] %v294_v17  ;;  %v536_v22 = vmul.f32 %v532_v19, %v520_v18 }
 0x1e2   :  { %v535_v23 = vmul.f32 %v531_v21, %v519_v20 }
 0x1e3   :  { %541 = vst [vmem:[#allocation3 + $0x38] sm:$0xff] %v536_v22 }
 0x1e4   :  { %540 = vst [vmem:[#allocation3 + $0x30] sm:$0xff] %v535_v23 }
 0x1e5   :  { %678 = shalt.err (!%p675_p4)
}
 0x1e6   :  { %s679_s17 = scalar_lea.hbm %s791_s3, 1024 }
 0x1e7   :  { %p680_p5 = scmp.ne.s32.totalorder %s791_s3, %s679_s17  ;;  %p683_p6 = scmp.lt.u32.totalorder %s679_s17, %s791_s3 }
 0x1e9   :  { %p685_p7 = pnand %p683_p6, %p680_p5 }
 0x1eb   :  { %688 = shalt.err (!%p685_p7)
}
 0x1ec   :  { %s696_s0 = smov 128   ;;  %s697_s22 = smov 8  }
 0x1ed   :  { %553 = dma.vmem_to_hbm [thread:$0]  %s548_s13, 1024, %s791_s3, [#allocation4], %s696_s0, %s696_s0, %s697_s22  }
 0x1ee   :  { %689 = dma.done.wait [#allocation4], 1024  }
 0x1ef   :  { %690 = vsyncadd [#allocation4], 4294966272 }
 0x1f0   :  { %557 = vsyncpa [#allocation4], 1 }

</bundles_post_ra>
